<compile_context>
chip_gen: v5e
topology: v5e:2x2
jax: 0.10.0
libtpu: 0.0.40
codegen_flags: <defaults>
</compile_context>

<pallas_src>
import functools

import jax
import jax.numpy as jnp
from jax.experimental import pallas as pl
from jax.experimental.pallas import tpu as pltpu


def kvmn_kernel(hs_ref, ea_ref, lvm_ref, mask_ref, ve_ref, o_ref, *,
                inv_temper, num_values):
    # Block shapes:
    #   hs_ref  : (BT, S, H)   hidden state               (bf16 or f32)
    #   ea_ref  : (BT, K, H)   gathered key embeddings    (bf16 or f32)
    #   lvm_ref : (BT, S, K)   int32 value ids
    #   mask_ref: (BT, S, K)   f32 word mask
    #   ve_ref  : (V, H)       full value-embedding table (resident, shared)
    #   o_ref   : (BT, S, H)   f32 output
    hs = hs_ref[...]
    ea = ea_ref[...]
    lvm = lvm_ref[...]
    mask = mask_ref[...].astype(jnp.float32)
    ve = ve_ref[...].astype(jnp.float32)

    bt, s, h = hs.shape
    k = lvm.shape[2]
    v = num_values

    # Attention logits on the MXU (batched over the batch tile), f32
    # accumulation; scale by a precomputed constant multiply (no divide).
    u = jnp.einsum('bsh,bkh->bsk', hs, ea,
                   preferred_element_type=jnp.float32) * inv_temper   # (BT,S,K)

    # Masked, *unnormalized* exp weights (normalization is deferred).
    mask_c = jnp.clip(mask, 0.0, 1.0)
    delta = jnp.exp(u) * mask_c                                       # (BT,S,K)
    denom = jnp.sum(delta, axis=2, keepdims=True) + 1e-10             # (BT,S,1)

    # Bucket the unnormalized weights by value id:
    #   delta_v[b,s,v] = sum_k delta[b,s,k] * [lvm[b,s,k] == v]
    # Accumulate one key slot at a time (K is a small static constant, so the
    # Python loop is fully unrolled static lane slices).  This keeps the live
    # intermediate at a (BT,S,V) slab instead of a (BT,S,K,V) blob whose
    # 128-lane padded footprint would grow with the batch tile.
    lvm = jnp.clip(lvm, 0, v - 1)        # match jnp.take clamp semantics
    v_iota = jax.lax.broadcasted_iota(jnp.int32, (1, 1, v), 2)        # tiny iota
    delta_v = jnp.zeros((bt, s, v), jnp.float32)
    for kk in range(k):
        onehot_k = (lvm[:, :, kk][..., None] == v_iota).astype(jnp.float32)
        delta_v = delta_v + delta[:, :, kk][..., None] * onehot_k     # (BT,S,V)

    # One MXU contraction against the resident value table.
    o2 = jnp.dot(delta_v.reshape(bt * s, v), ve,
                 preferred_element_type=jnp.float32)                  # (BT*S,H)

    # Deferred normalization: EUP approximate reciprocal + one Newton step
    # (~f32 accuracy); cost is a few VPU ops on BT*S scalars.
    inv_denom = pl.reciprocal(denom, approx=True)                     # (BT,S,1)
    inv_denom = inv_denom * (2.0 - denom * inv_denom)

    o_ref[...] = (o2.reshape(bt, s, h) * inv_denom).astype(o_ref.dtype)


def kvmn_forward(word_seq, hidden_state, label_value_matrix, word_mask_matrix,
                 key_embedding, value_embedding, *, batch_tile=None,
                 compute_dtype=jnp.bfloat16, vmem_limit_bytes=None):
    B, S, H = hidden_state.shape
    K = word_seq.shape[1]
    V = value_embedding.shape[0]
    inv_temper = 1.0 / (float(H) ** 0.5)

    # ---------- VMEM-budgeted batch-tile selection ----------
    itemsize = jnp.dtype(compute_dtype).itemsize
    lane_pad = lambda n: -(-n // 128) * 128   # pad last dim to 128 lanes

    # Double-buffered HBM<->VMEM block bytes per batch element.
    blk_b = 2 * (S * H * itemsize       # hidden state
                 + K * H * itemsize     # key embeddings
                 + S * K * 4            # value ids (int32)
                 + S * K * 4            # mask (f32)
                 + S * H * 4)           # output (f32)
    # Conservative in-kernel f32 intermediates per batch element, padded to
    # 128-lane vreg tiles (logits/delta over K, bucketing slabs over V, output
    # slabs over H).
    interm_b = 4 * S * (3 * lane_pad(K) + 3 * lane_pad(V) + 2 * lane_pad(H))
    per_b = blk_b + interm_b

    if batch_tile is None:
        budget = 24 << 20                        # working-set target (<< 64 MiB)
        bt = max(1, min(budget // per_b, 512))   # amortize ~0.35us/step overhead
        bt = min(bt, max(1, B // 2))             # >=2 grid steps: both v7x TCs busy
        while B % bt:                            # largest divisor of B <= bt
            bt -= 1
    else:
        bt = int(batch_tile)
        if bt <= 0 or B % bt:
            raise ValueError(f"batch_tile={batch_tile} must be >0 and divide B={B}")
    grid = (B // bt,)

    if vmem_limit_bytes is None:
        # ~2x headroom over the estimate, capped well below v7x's 64 MiB VMEM.
        vmem_limit_bytes = int(min(max(2 * per_b * bt, 8 << 20), 48 << 20))

    # Small (B,K,H) key-embedding gather stays as XLA glue; the large
    # (B,S,K,H) value-embedding gather is never materialized (the kernel
    # contracts against the resident (V,H) table instead).
    ea = jnp.take(key_embedding, word_seq, axis=0)                    # (B,K,H)

    hs = hidden_state.astype(compute_dtype)
    ea = ea.astype(compute_dtype)
    lvm = label_value_matrix.astype(jnp.int32)
    mask = word_mask_matrix.astype(jnp.float32)
    ve = value_embedding.astype(jnp.float32)

    kernel = functools.partial(kvmn_kernel, inv_temper=inv_temper, num_values=V)
    out = pl.pallas_call(
        kernel,
        out_shape=jax.ShapeDtypeStruct((B, S, H), jnp.float32),
        grid=grid,
        in_specs=[
            pl.BlockSpec((bt, S, H), lambda b: (b, 0, 0)),   # hidden state
            pl.BlockSpec((bt, K, H), lambda b: (b, 0, 0)),   # key embeddings
            pl.BlockSpec((bt, S, K), lambda b: (b, 0, 0)),   # value ids (int32)
            pl.BlockSpec((bt, S, K), lambda b: (b, 0, 0)),   # word mask
            # Resident value table: constant block index across the grid.
            # (Single-buffering it would save ~V*H*4 bytes only; not worth the
            #  pipeline_mode plumbing at this size.)
            pl.BlockSpec((V, H), lambda b: (0, 0)),
        ],
        out_specs=pl.BlockSpec((bt, S, H), lambda b: (b, 0, 0)),
        compiler_params=pltpu.CompilerParams(
            dimension_semantics=("parallel",),
            vmem_limit_bytes=vmem_limit_bytes,
        ),
    )(hs, ea, lvm, mask, ve)
    return out


def kvmn_reference(word_seq, hidden_state, label_value_matrix, word_mask_matrix,
                   key_embedding, value_embedding):
    # Pure-JAX f32 reference mirroring the PyTorch forward exactly.
    H = hidden_state.shape[-1]
    temper = float(H) ** 0.5
    ea = jnp.take(key_embedding, word_seq, axis=0)              # (B, K, H)
    ec = jnp.take(value_embedding, label_value_matrix, axis=0)  # (B, S, K, H)
    u = jnp.matmul(hidden_state, jnp.transpose(ea, (0, 2, 1))) / temper  # (B,S,K)
    mask_c = jnp.clip(word_mask_matrix, 0.0, 1.0)
    exp_u = jnp.exp(u)
    delta = exp_u * mask_c
    denom = jnp.sum(delta, axis=2, keepdims=True)
    p = delta / (denom + 1e-10)
    o = jnp.sum(p[..., None] * ec, axis=2)                      # (B, S, H)
    return o


if __name__ == "__main__":
    # Small deterministic shapes consistent with the module's forward.
    B, S, K, H = 2, 8, 16, 32
    key_size, value_size = 20, 10

    root = jax.random.PRNGKey(0)
    k_we_key, k_we_val, k_ws, k_hs, k_lvm, k_mask = jax.random.split(root, 6)

    # Deterministic parameter init (nn.Embedding default ~ N(0, 1)).
    key_embedding = jax.random.normal(k_we_key, (key_size, H), dtype=jnp.float32)
    value_embedding = jax.random.normal(k_we_val, (value_size, H), dtype=jnp.float32)

    word_seq = jax.random.randint(k_ws, (B, K), 0, key_size, dtype=jnp.int32)
    hidden_state = jax.random.normal(k_hs, (B, S, H), dtype=jnp.float32)
    label_value_matrix = jax.random.randint(
        k_lvm, (B, S, K), 0, value_size, dtype=jnp.int32)
    # Mask values outside [0, 1] to exercise the clamp.
    word_mask_matrix = jax.random.uniform(
        k_mask, (B, S, K), minval=-0.5, maxval=1.5, dtype=jnp.float32)

    ref = kvmn_reference(word_seq, hidden_state, label_value_matrix,
                         word_mask_matrix, key_embedding, value_embedding)
    ref = jax.block_until_ready(ref)

    # 1) Default (bf16 operand) performance path. Tolerance reflects bf16
    #    quantization of the logits-matmul operands, not kernel structure.
    out_bf16 = kvmn_forward(word_seq, hidden_state, label_value_matrix,
                            word_mask_matrix, key_embedding, value_embedding)
    out_bf16 = jax.block_until_ready(out_bf16)
    assert out_bf16.shape == (B, S, H), out_bf16.shape
    assert jnp.allclose(out_bf16, ref, atol=3e-2, rtol=3e-2), (
        float(jnp.max(jnp.abs(out_bf16 - ref))))

    # 2) Full-precision path (same kernel, f32 operands), tight tolerance.
    out_f32 = kvmn_forward(word_seq, hidden_state, label_value_matrix,
                           word_mask_matrix, key_embedding, value_embedding,
                           compute_dtype=jnp.float32)
    out_f32 = jax.block_until_ready(out_f32)
    assert jnp.allclose(out_f32, ref, atol=1e-3, rtol=1e-3), (
        float(jnp.max(jnp.abs(out_f32 - ref))))

    # 3) Exercise a multi-element batch tile (bt > 1) and the auto-derived
    #    >=2-step grid on a slightly larger batch.
    B2 = 16
    k2_hs, k2_lvm, k2_mask, k2_ws = jax.random.split(jax.random.PRNGKey(1), 4)
    word_seq2 = jax.random.randint(k2_ws, (B2, K), 0, key_size, dtype=jnp.int32)
    hidden_state2 = jax.random.normal(k2_hs, (B2, S, H), dtype=jnp.float32)
    label_value_matrix2 = jax.random.randint(
        k2_lvm, (B2, S, K), 0, value_size, dtype=jnp.int32)
    word_mask_matrix2 = jax.random.uniform(
        k2_mask, (B2, S, K), minval=-0.5, maxval=1.5, dtype=jnp.float32)
    out2 = kvmn_forward(word_seq2, hidden_state2, label_value_matrix2,
                        word_mask_matrix2, key_embedding, value_embedding)
    out2 = jax.block_until_ready(out2)
    ref2 = jax.block_until_ready(
        kvmn_reference(word_seq2, hidden_state2, label_value_matrix2,
                       word_mask_matrix2, key_embedding, value_embedding))
    assert jnp.allclose(out2, ref2, atol=3e-2, rtol=3e-2), (
        float(jnp.max(jnp.abs(out2 - ref2))))

    print("KERNEL_OK")
</pallas_src>

<mosaic_0001>
module attributes {stable_mosaic.version = 11 : i64} {
  func.func @kvmn_kernel(%arg0: i32, %arg1: memref<1x8x32xbf16, #tpu.memory_space<vmem>>, %arg2: memref<1x16x32xbf16, #tpu.memory_space<vmem>>, %arg3: memref<1x8x16xi32, #tpu.memory_space<vmem>>, %arg4: memref<1x8x16xf32, #tpu.memory_space<vmem>>, %arg5: memref<10x32xf32, #tpu.memory_space<vmem>>, %arg6: memref<1x8x32xf32, #tpu.memory_space<vmem>>) attributes {dimension_semantics = [#tpu.dimension_semantics<parallel>], iteration_bounds = array<i64: 2>, scalar_prefetch = 0 : i64, scratch_operands = 0 : i64, tpu.core_type = #tpu.core_type<tc>, window_params = [{transform_indices = @transform_0, window_bounds = array<i64: 1, 8, 32>}, {transform_indices = @transform_1, window_bounds = array<i64: 1, 16, 32>}, {transform_indices = @transform_2, window_bounds = array<i64: 1, 8, 16>}, {transform_indices = @transform_3, window_bounds = array<i64: 1, 8, 16>}, {pipeline_mode = #tpu.pipeline_mode<synchronous>, transform_indices = @transform_4, window_bounds = array<i64: 10, 32>}, {transform_indices = @transform_5, window_bounds = array<i64: 1, 8, 32>}]} {
    %c0 = arith.constant 0 : index
    %c0_0 = arith.constant 0 : index
    %c0_1 = arith.constant 0 : index
    %0 = vector.load %arg1[%c0, %c0_0, %c0_1] : memref<1x8x32xbf16, #tpu.memory_space<vmem>>, vector<1x8x32xbf16>
    %c0_2 = arith.constant 0 : index
    %c0_3 = arith.constant 0 : index
    %c0_4 = arith.constant 0 : index
    %1 = vector.load %arg2[%c0_2, %c0_3, %c0_4] : memref<1x16x32xbf16, #tpu.memory_space<vmem>>, vector<1x16x32xbf16>
    %c0_5 = arith.constant 0 : index
    %c0_6 = arith.constant 0 : index
    %c0_7 = arith.constant 0 : index
    %2 = vector.load %arg3[%c0_5, %c0_6, %c0_7] : memref<1x8x16xi32, #tpu.memory_space<vmem>>, vector<1x8x16xi32>
    %c0_8 = arith.constant 0 : index
    %c0_9 = arith.constant 0 : index
    %c0_10 = arith.constant 0 : index
    %3 = vector.load %arg4[%c0_8, %c0_9, %c0_10] : memref<1x8x16xf32, #tpu.memory_space<vmem>>, vector<1x8x16xf32>
    %c0_11 = arith.constant 0 : index
    %c0_12 = arith.constant 0 : index
    %4 = vector.load %arg5[%c0_11, %c0_12] : memref<10x32xf32, #tpu.memory_space<vmem>>, vector<10x32xf32>
    "tpu.trace_start"() <{level = 10 : i32, message = "bsh,bkh->bsk"}> : () -> ()
    %cst = arith.constant dense<0.000000e+00> : vector<1x8x16xf32>
    %5 = tpu.matmul %0, %1, %cst {dimension_numbers = #tpu.dot_dimension_numbers<[2], [2], [1], [1], [0, 0, 0, 1, 1, 1], [0], [0]>} : vector<1x8x32xbf16>, vector<1x16x32xbf16>, vector<1x8x16xf32> -> vector<1x8x16xf32>
    "tpu.trace_stop"() : () -> ()
    %cst_13 = arith.constant 0.176776692 : f32
    %6 = vector.broadcast %cst_13 : f32 to vector<1x8x16xf32>
    %7 = arith.mulf %5, %6 : vector<1x8x16xf32>
    %cst_14 = arith.constant 0.000000e+00 : f32
    %cst_15 = arith.constant 1.000000e+00 : f32
    %8 = vector.broadcast %cst_14 : f32 to vector<1x8x16xf32>
    %9 = arith.maximumf %8, %3 : vector<1x8x16xf32>
    %10 = vector.broadcast %cst_15 : f32 to vector<1x8x16xf32>
    %11 = arith.minimumf %10, %9 : vector<1x8x16xf32>
    %12 = math.exp %7 : vector<1x8x16xf32>
    %13 = arith.mulf %12, %11 : vector<1x8x16xf32>
    %cst_16 = arith.constant dense<0.000000e+00> : vector<1x8xf32>
    %14 = vector.multi_reduction <add>, %13, %cst_16 [2] : vector<1x8x16xf32> to vector<1x8xf32>
    %15 = vector.shape_cast %14 : vector<1x8xf32> to vector<1x8x1xf32>
    %cst_17 = arith.constant 1.000000e-10 : f32
    %16 = vector.broadcast %cst_17 : f32 to vector<1x8x1xf32>
    %17 = arith.addf %15, %16 : vector<1x8x1xf32>
    %c0_i32 = arith.constant 0 : i32
    %c9_i32 = arith.constant 9 : i32
    %18 = vector.broadcast %c0_i32 : i32 to vector<1x8x16xi32>
    %19 = arith.maxsi %18, %2 : vector<1x8x16xi32>
    %20 = vector.broadcast %c9_i32 : i32 to vector<1x8x16xi32>
    %21 = arith.minsi %20, %19 : vector<1x8x16xi32>
    %22 = tpu.iota {dimensions = array<i32: 2>} : vector<1x1x10xi32>
    %cst_18 = arith.constant 0.000000e+00 : f32
    %23 = vector.broadcast %cst_18 : f32 to vector<1x8x10xf32>
    %24 = vector.extract_strided_slice %21 {offsets = [0, 0, 0], sizes = [1, 8, 1], strides = [1, 1, 1]} : vector<1x8x16xi32> to vector<1x8x1xi32>
    %25 = vector.shape_cast %24 : vector<1x8x1xi32> to vector<1x8xi32>
    %26 = vector.shape_cast %25 : vector<1x8xi32> to vector<1x8x1xi32>
    %27 = vector.broadcast %26 : vector<1x8x1xi32> to vector<1x8x10xi32>
    %28 = vector.broadcast %22 : vector<1x1x10xi32> to vector<1x8x10xi32>
    %29 = arith.cmpi eq, %27, %28 : vector<1x8x10xi32>
    %30 = arith.extui %29 : vector<1x8x10xi1> to vector<1x8x10xi32>
    %31 = arith.sitofp %30 : vector<1x8x10xi32> to vector<1x8x10xf32>
    %32 = vector.extract_strided_slice %13 {offsets = [0, 0, 0], sizes = [1, 8, 1], strides = [1, 1, 1]} : vector<1x8x16xf32> to vector<1x8x1xf32>
    %33 = vector.shape_cast %32 : vector<1x8x1xf32> to vector<1x8xf32>
    %34 = vector.shape_cast %33 : vector<1x8xf32> to vector<1x8x1xf32>
    %35 = vector.broadcast %34 : vector<1x8x1xf32> to vector<1x8x10xf32>
    %36 = arith.mulf %35, %31 : vector<1x8x10xf32>
    %37 = arith.addf %23, %36 : vector<1x8x10xf32>
    %38 = vector.extract_strided_slice %21 {offsets = [0, 0, 1], sizes = [1, 8, 1], strides = [1, 1, 1]} : vector<1x8x16xi32> to vector<1x8x1xi32>
    %39 = vector.shape_cast %38 : vector<1x8x1xi32> to vector<1x8xi32>
    %40 = vector.shape_cast %39 : vector<1x8xi32> to vector<1x8x1xi32>
    %41 = vector.broadcast %40 : vector<1x8x1xi32> to vector<1x8x10xi32>
    %42 = vector.broadcast %22 : vector<1x1x10xi32> to vector<1x8x10xi32>
    %43 = arith.cmpi eq, %41, %42 : vector<1x8x10xi32>
    %44 = arith.extui %43 : vector<1x8x10xi1> to vector<1x8x10xi32>
    %45 = arith.sitofp %44 : vector<1x8x10xi32> to vector<1x8x10xf32>
    %46 = vector.extract_strided_slice %13 {offsets = [0, 0, 1], sizes = [1, 8, 1], strides = [1, 1, 1]} : vector<1x8x16xf32> to vector<1x8x1xf32>
    %47 = vector.shape_cast %46 : vector<1x8x1xf32> to vector<1x8xf32>
    %48 = vector.shape_cast %47 : vector<1x8xf32> to vector<1x8x1xf32>
    %49 = vector.broadcast %48 : vector<1x8x1xf32> to vector<1x8x10xf32>
    %50 = arith.mulf %49, %45 : vector<1x8x10xf32>
    %51 = arith.addf %37, %50 : vector<1x8x10xf32>
    %52 = vector.extract_strided_slice %21 {offsets = [0, 0, 2], sizes = [1, 8, 1], strides = [1, 1, 1]} : vector<1x8x16xi32> to vector<1x8x1xi32>
    %53 = vector.shape_cast %52 : vector<1x8x1xi32> to vector<1x8xi32>
    %54 = vector.shape_cast %53 : vector<1x8xi32> to vector<1x8x1xi32>
    %55 = vector.broadcast %54 : vector<1x8x1xi32> to vector<1x8x10xi32>
    %56 = vector.broadcast %22 : vector<1x1x10xi32> to vector<1x8x10xi32>
    %57 = arith.cmpi eq, %55, %56 : vector<1x8x10xi32>
    %58 = arith.extui %57 : vector<1x8x10xi1> to vector<1x8x10xi32>
    %59 = arith.sitofp %58 : vector<1x8x10xi32> to vector<1x8x10xf32>
    %60 = vector.extract_strided_slice %13 {offsets = [0, 0, 2], sizes = [1, 8, 1], strides = [1, 1, 1]} : vector<1x8x16xf32> to vector<1x8x1xf32>
    %61 = vector.shape_cast %60 : vector<1x8x1xf32> to vector<1x8xf32>
    %62 = vector.shape_cast %61 : vector<1x8xf32> to vector<1x8x1xf32>
    %63 = vector.broadcast %62 : vector<1x8x1xf32> to vector<1x8x10xf32>
    %64 = arith.mulf %63, %59 : vector<1x8x10xf32>
    %65 = arith.addf %51, %64 : vector<1x8x10xf32>
    %66 = vector.extract_strided_slice %21 {offsets = [0, 0, 3], sizes = [1, 8, 1], strides = [1, 1, 1]} : vector<1x8x16xi32> to vector<1x8x1xi32>
    %67 = vector.shape_cast %66 : vector<1x8x1xi32> to vector<1x8xi32>
    %68 = vector.shape_cast %67 : vector<1x8xi32> to vector<1x8x1xi32>
    %69 = vector.broadcast %68 : vector<1x8x1xi32> to vector<1x8x10xi32>
    %70 = vector.broadcast %22 : vector<1x1x10xi32> to vector<1x8x10xi32>
    %71 = arith.cmpi eq, %69, %70 : vector<1x8x10xi32>
    %72 = arith.extui %71 : vector<1x8x10xi1> to vector<1x8x10xi32>
    %73 = arith.sitofp %72 : vector<1x8x10xi32> to vector<1x8x10xf32>
    %74 = vector.extract_strided_slice %13 {offsets = [0, 0, 3], sizes = [1, 8, 1], strides = [1, 1, 1]} : vector<1x8x16xf32> to vector<1x8x1xf32>
    %75 = vector.shape_cast %74 : vector<1x8x1xf32> to vector<1x8xf32>
    %76 = vector.shape_cast %75 : vector<1x8xf32> to vector<1x8x1xf32>
    %77 = vector.broadcast %76 : vector<1x8x1xf32> to vector<1x8x10xf32>
    %78 = arith.mulf %77, %73 : vector<1x8x10xf32>
    %79 = arith.addf %65, %78 : vector<1x8x10xf32>
    %80 = vector.extract_strided_slice %21 {offsets = [0, 0, 4], sizes = [1, 8, 1], strides = [1, 1, 1]} : vector<1x8x16xi32> to vector<1x8x1xi32>
    %81 = vector.shape_cast %80 : vector<1x8x1xi32> to vector<1x8xi32>
    %82 = vector.shape_cast %81 : vector<1x8xi32> to vector<1x8x1xi32>
    %83 = vector.broadcast %82 : vector<1x8x1xi32> to vector<1x8x10xi32>
    %84 = vector.broadcast %22 : vector<1x1x10xi32> to vector<1x8x10xi32>
    %85 = arith.cmpi eq, %83, %84 : vector<1x8x10xi32>
    %86 = arith.extui %85 : vector<1x8x10xi1> to vector<1x8x10xi32>
    %87 = arith.sitofp %86 : vector<1x8x10xi32> to vector<1x8x10xf32>
    %88 = vector.extract_strided_slice %13 {offsets = [0, 0, 4], sizes = [1, 8, 1], strides = [1, 1, 1]} : vector<1x8x16xf32> to vector<1x8x1xf32>
    %89 = vector.shape_cast %88 : vector<1x8x1xf32> to vector<1x8xf32>
    %90 = vector.shape_cast %89 : vector<1x8xf32> to vector<1x8x1xf32>
    %91 = vector.broadcast %90 : vector<1x8x1xf32> to vector<1x8x10xf32>
    %92 = arith.mulf %91, %87 : vector<1x8x10xf32>
    %93 = arith.addf %79, %92 : vector<1x8x10xf32>
    %94 = vector.extract_strided_slice %21 {offsets = [0, 0, 5], sizes = [1, 8, 1], strides = [1, 1, 1]} : vector<1x8x16xi32> to vector<1x8x1xi32>
    %95 = vector.shape_cast %94 : vector<1x8x1xi32> to vector<1x8xi32>
    %96 = vector.shape_cast %95 : vector<1x8xi32> to vector<1x8x1xi32>
    %97 = vector.broadcast %96 : vector<1x8x1xi32> to vector<1x8x10xi32>
    %98 = vector.broadcast %22 : vector<1x1x10xi32> to vector<1x8x10xi32>
    %99 = arith.cmpi eq, %97, %98 : vector<1x8x10xi32>
    %100 = arith.extui %99 : vector<1x8x10xi1> to vector<1x8x10xi32>
    %101 = arith.sitofp %100 : vector<1x8x10xi32> to vector<1x8x10xf32>
    %102 = vector.extract_strided_slice %13 {offsets = [0, 0, 5], sizes = [1, 8, 1], strides = [1, 1, 1]} : vector<1x8x16xf32> to vector<1x8x1xf32>
    %103 = vector.shape_cast %102 : vector<1x8x1xf32> to vector<1x8xf32>
    %104 = vector.shape_cast %103 : vector<1x8xf32> to vector<1x8x1xf32>
    %105 = vector.broadcast %104 : vector<1x8x1xf32> to vector<1x8x10xf32>
    %106 = arith.mulf %105, %101 : vector<1x8x10xf32>
    %107 = arith.addf %93, %106 : vector<1x8x10xf32>
    %108 = vector.extract_strided_slice %21 {offsets = [0, 0, 6], sizes = [1, 8, 1], strides = [1, 1, 1]} : vector<1x8x16xi32> to vector<1x8x1xi32>
    %109 = vector.shape_cast %108 : vector<1x8x1xi32> to vector<1x8xi32>
    %110 = vector.shape_cast %109 : vector<1x8xi32> to vector<1x8x1xi32>
    %111 = vector.broadcast %110 : vector<1x8x1xi32> to vector<1x8x10xi32>
    %112 = vector.broadcast %22 : vector<1x1x10xi32> to vector<1x8x10xi32>
    %113 = arith.cmpi eq, %111, %112 : vector<1x8x10xi32>
    %114 = arith.extui %113 : vector<1x8x10xi1> to vector<1x8x10xi32>
    %115 = arith.sitofp %114 : vector<1x8x10xi32> to vector<1x8x10xf32>
    %116 = vector.extract_strided_slice %13 {offsets = [0, 0, 6], sizes = [1, 8, 1], strides = [1, 1, 1]} : vector<1x8x16xf32> to vector<1x8x1xf32>
    %117 = vector.shape_cast %116 : vector<1x8x1xf32> to vector<1x8xf32>
    %118 = vector.shape_cast %117 : vector<1x8xf32> to vector<1x8x1xf32>
    %119 = vector.broadcast %118 : vector<1x8x1xf32> to vector<1x8x10xf32>
    %120 = arith.mulf %119, %115 : vector<1x8x10xf32>
    %121 = arith.addf %107, %120 : vector<1x8x10xf32>
    %122 = vector.extract_strided_slice %21 {offsets = [0, 0, 7], sizes = [1, 8, 1], strides = [1, 1, 1]} : vector<1x8x16xi32> to vector<1x8x1xi32>
    %123 = vector.shape_cast %122 : vector<1x8x1xi32> to vector<1x8xi32>
    %124 = vector.shape_cast %123 : vector<1x8xi32> to vector<1x8x1xi32>
    %125 = vector.broadcast %124 : vector<1x8x1xi32> to vector<1x8x10xi32>
    %126 = vector.broadcast %22 : vector<1x1x10xi32> to vector<1x8x10xi32>
    %127 = arith.cmpi eq, %125, %126 : vector<1x8x10xi32>
    %128 = arith.extui %127 : vector<1x8x10xi1> to vector<1x8x10xi32>
    %129 = arith.sitofp %128 : vector<1x8x10xi32> to vector<1x8x10xf32>
    %130 = vector.extract_strided_slice %13 {offsets = [0, 0, 7], sizes = [1, 8, 1], strides = [1, 1, 1]} : vector<1x8x16xf32> to vector<1x8x1xf32>
    %131 = vector.shape_cast %130 : vector<1x8x1xf32> to vector<1x8xf32>
    %132 = vector.shape_cast %131 : vector<1x8xf32> to vector<1x8x1xf32>
    %133 = vector.broadcast %132 : vector<1x8x1xf32> to vector<1x8x10xf32>
    %134 = arith.mulf %133, %129 : vector<1x8x10xf32>
    %135 = arith.addf %121, %134 : vector<1x8x10xf32>
    %136 = vector.extract_strided_slice %21 {offsets = [0, 0, 8], sizes = [1, 8, 1], strides = [1, 1, 1]} : vector<1x8x16xi32> to vector<1x8x1xi32>
    %137 = vector.shape_cast %136 : vector<1x8x1xi32> to vector<1x8xi32>
    %138 = vector.shape_cast %137 : vector<1x8xi32> to vector<1x8x1xi32>
    %139 = vector.broadcast %138 : vector<1x8x1xi32> to vector<1x8x10xi32>
    %140 = vector.broadcast %22 : vector<1x1x10xi32> to vector<1x8x10xi32>
    %141 = arith.cmpi eq, %139, %140 : vector<1x8x10xi32>
    %142 = arith.extui %141 : vector<1x8x10xi1> to vector<1x8x10xi32>
    %143 = arith.sitofp %142 : vector<1x8x10xi32> to vector<1x8x10xf32>
    %144 = vector.extract_strided_slice %13 {offsets = [0, 0, 8], sizes = [1, 8, 1], strides = [1, 1, 1]} : vector<1x8x16xf32> to vector<1x8x1xf32>
    %145 = vector.shape_cast %144 : vector<1x8x1xf32> to vector<1x8xf32>
    %146 = vector.shape_cast %145 : vector<1x8xf32> to vector<1x8x1xf32>
    %147 = vector.broadcast %146 : vector<1x8x1xf32> to vector<1x8x10xf32>
    %148 = arith.mulf %147, %143 : vector<1x8x10xf32>
    %149 = arith.addf %135, %148 : vector<1x8x10xf32>
    %150 = vector.extract_strided_slice %21 {offsets = [0, 0, 9], sizes = [1, 8, 1], strides = [1, 1, 1]} : vector<1x8x16xi32> to vector<1x8x1xi32>
    %151 = vector.shape_cast %150 : vector<1x8x1xi32> to vector<1x8xi32>
    %152 = vector.shape_cast %151 : vector<1x8xi32> to vector<1x8x1xi32>
    %153 = vector.broadcast %152 : vector<1x8x1xi32> to vector<1x8x10xi32>
    %154 = vector.broadcast %22 : vector<1x1x10xi32> to vector<1x8x10xi32>
    %155 = arith.cmpi eq, %153, %154 : vector<1x8x10xi32>
    %156 = arith.extui %155 : vector<1x8x10xi1> to vector<1x8x10xi32>
    %157 = arith.sitofp %156 : vector<1x8x10xi32> to vector<1x8x10xf32>
    %158 = vector.extract_strided_slice %13 {offsets = [0, 0, 9], sizes = [1, 8, 1], strides = [1, 1, 1]} : vector<1x8x16xf32> to vector<1x8x1xf32>
    %159 = vector.shape_cast %158 : vector<1x8x1xf32> to vector<1x8xf32>
    %160 = vector.shape_cast %159 : vector<1x8xf32> to vector<1x8x1xf32>
    %161 = vector.broadcast %160 : vector<1x8x1xf32> to vector<1x8x10xf32>
    %162 = arith.mulf %161, %157 : vector<1x8x10xf32>
    %163 = arith.addf %149, %162 : vector<1x8x10xf32>
    %164 = vector.extract_strided_slice %21 {offsets = [0, 0, 10], sizes = [1, 8, 1], strides = [1, 1, 1]} : vector<1x8x16xi32> to vector<1x8x1xi32>
    %165 = vector.shape_cast %164 : vector<1x8x1xi32> to vector<1x8xi32>
    %166 = vector.shape_cast %165 : vector<1x8xi32> to vector<1x8x1xi32>
    %167 = vector.broadcast %166 : vector<1x8x1xi32> to vector<1x8x10xi32>
    %168 = vector.broadcast %22 : vector<1x1x10xi32> to vector<1x8x10xi32>
    %169 = arith.cmpi eq, %167, %168 : vector<1x8x10xi32>
    %170 = arith.extui %169 : vector<1x8x10xi1> to vector<1x8x10xi32>
    %171 = arith.sitofp %170 : vector<1x8x10xi32> to vector<1x8x10xf32>
    %172 = vector.extract_strided_slice %13 {offsets = [0, 0, 10], sizes = [1, 8, 1], strides = [1, 1, 1]} : vector<1x8x16xf32> to vector<1x8x1xf32>
    %173 = vector.shape_cast %172 : vector<1x8x1xf32> to vector<1x8xf32>
    %174 = vector.shape_cast %173 : vector<1x8xf32> to vector<1x8x1xf32>
    %175 = vector.broadcast %174 : vector<1x8x1xf32> to vector<1x8x10xf32>
    %176 = arith.mulf %175, %171 : vector<1x8x10xf32>
    %177 = arith.addf %163, %176 : vector<1x8x10xf32>
    %178 = vector.extract_strided_slice %21 {offsets = [0, 0, 11], sizes = [1, 8, 1], strides = [1, 1, 1]} : vector<1x8x16xi32> to vector<1x8x1xi32>
    %179 = vector.shape_cast %178 : vector<1x8x1xi32> to vector<1x8xi32>
    %180 = vector.shape_cast %179 : vector<1x8xi32> to vector<1x8x1xi32>
    %181 = vector.broadcast %180 : vector<1x8x1xi32> to vector<1x8x10xi32>
    %182 = vector.broadcast %22 : vector<1x1x10xi32> to vector<1x8x10xi32>
    %183 = arith.cmpi eq, %181, %182 : vector<1x8x10xi32>
    %184 = arith.extui %183 : vector<1x8x10xi1> to vector<1x8x10xi32>
    %185 = arith.sitofp %184 : vector<1x8x10xi32> to vector<1x8x10xf32>
    %186 = vector.extract_strided_slice %13 {offsets = [0, 0, 11], sizes = [1, 8, 1], strides = [1, 1, 1]} : vector<1x8x16xf32> to vector<1x8x1xf32>
    %187 = vector.shape_cast %186 : vector<1x8x1xf32> to vector<1x8xf32>
    %188 = vector.shape_cast %187 : vector<1x8xf32> to vector<1x8x1xf32>
    %189 = vector.broadcast %188 : vector<1x8x1xf32> to vector<1x8x10xf32>
    %190 = arith.mulf %189, %185 : vector<1x8x10xf32>
    %191 = arith.addf %177, %190 : vector<1x8x10xf32>
    %192 = vector.extract_strided_slice %21 {offsets = [0, 0, 12], sizes = [1, 8, 1], strides = [1, 1, 1]} : vector<1x8x16xi32> to vector<1x8x1xi32>
    %193 = vector.shape_cast %192 : vector<1x8x1xi32> to vector<1x8xi32>
    %194 = vector.shape_cast %193 : vector<1x8xi32> to vector<1x8x1xi32>
    %195 = vector.broadcast %194 : vector<1x8x1xi32> to vector<1x8x10xi32>
    %196 = vector.broadcast %22 : vector<1x1x10xi32> to vector<1x8x10xi32>
    %197 = arith.cmpi eq, %195, %196 : vector<1x8x10xi32>
    %198 = arith.extui %197 : vector<1x8x10xi1> to vector<1x8x10xi32>
    %199 = arith.sitofp %198 : vector<1x8x10xi32> to vector<1x8x10xf32>
    %200 = vector.extract_strided_slice %13 {offsets = [0, 0, 12], sizes = [1, 8, 1], strides = [1, 1, 1]} : vector<1x8x16xf32> to vector<1x8x1xf32>
    %201 = vector.shape_cast %200 : vector<1x8x1xf32> to vector<1x8xf32>
    %202 = vector.shape_cast %201 : vector<1x8xf32> to vector<1x8x1xf32>
    %203 = vector.broadcast %202 : vector<1x8x1xf32> to vector<1x8x10xf32>
    %204 = arith.mulf %203, %199 : vector<1x8x10xf32>
    %205 = arith.addf %191, %204 : vector<1x8x10xf32>
    %206 = vector.extract_strided_slice %21 {offsets = [0, 0, 13], sizes = [1, 8, 1], strides = [1, 1, 1]} : vector<1x8x16xi32> to vector<1x8x1xi32>
    %207 = vector.shape_cast %206 : vector<1x8x1xi32> to vector<1x8xi32>
    %208 = vector.shape_cast %207 : vector<1x8xi32> to vector<1x8x1xi32>
    %209 = vector.broadcast %208 : vector<1x8x1xi32> to vector<1x8x10xi32>
    %210 = vector.broadcast %22 : vector<1x1x10xi32> to vector<1x8x10xi32>
    %211 = arith.cmpi eq, %209, %210 : vector<1x8x10xi32>
    %212 = arith.extui %211 : vector<1x8x10xi1> to vector<1x8x10xi32>
    %213 = arith.sitofp %212 : vector<1x8x10xi32> to vector<1x8x10xf32>
    %214 = vector.extract_strided_slice %13 {offsets = [0, 0, 13], sizes = [1, 8, 1], strides = [1, 1, 1]} : vector<1x8x16xf32> to vector<1x8x1xf32>
    %215 = vector.shape_cast %214 : vector<1x8x1xf32> to vector<1x8xf32>
    %216 = vector.shape_cast %215 : vector<1x8xf32> to vector<1x8x1xf32>
    %217 = vector.broadcast %216 : vector<1x8x1xf32> to vector<1x8x10xf32>
    %218 = arith.mulf %217, %213 : vector<1x8x10xf32>
    %219 = arith.addf %205, %218 : vector<1x8x10xf32>
    %220 = vector.extract_strided_slice %21 {offsets = [0, 0, 14], sizes = [1, 8, 1], strides = [1, 1, 1]} : vector<1x8x16xi32> to vector<1x8x1xi32>
    %221 = vector.shape_cast %220 : vector<1x8x1xi32> to vector<1x8xi32>
    %222 = vector.shape_cast %221 : vector<1x8xi32> to vector<1x8x1xi32>
    %223 = vector.broadcast %222 : vector<1x8x1xi32> to vector<1x8x10xi32>
    %224 = vector.broadcast %22 : vector<1x1x10xi32> to vector<1x8x10xi32>
    %225 = arith.cmpi eq, %223, %224 : vector<1x8x10xi32>
    %226 = arith.extui %225 : vector<1x8x10xi1> to vector<1x8x10xi32>
    %227 = arith.sitofp %226 : vector<1x8x10xi32> to vector<1x8x10xf32>
    %228 = vector.extract_strided_slice %13 {offsets = [0, 0, 14], sizes = [1, 8, 1], strides = [1, 1, 1]} : vector<1x8x16xf32> to vector<1x8x1xf32>
    %229 = vector.shape_cast %228 : vector<1x8x1xf32> to vector<1x8xf32>
    %230 = vector.shape_cast %229 : vector<1x8xf32> to vector<1x8x1xf32>
    %231 = vector.broadcast %230 : vector<1x8x1xf32> to vector<1x8x10xf32>
    %232 = arith.mulf %231, %227 : vector<1x8x10xf32>
    %233 = arith.addf %219, %232 : vector<1x8x10xf32>
    %234 = vector.extract_strided_slice %21 {offsets = [0, 0, 15], sizes = [1, 8, 1], strides = [1, 1, 1]} : vector<1x8x16xi32> to vector<1x8x1xi32>
    %235 = vector.shape_cast %234 : vector<1x8x1xi32> to vector<1x8xi32>
    %236 = vector.shape_cast %235 : vector<1x8xi32> to vector<1x8x1xi32>
    %237 = vector.broadcast %236 : vector<1x8x1xi32> to vector<1x8x10xi32>
    %238 = vector.broadcast %22 : vector<1x1x10xi32> to vector<1x8x10xi32>
    %239 = arith.cmpi eq, %237, %238 : vector<1x8x10xi32>
    %240 = arith.extui %239 : vector<1x8x10xi1> to vector<1x8x10xi32>
    %241 = arith.sitofp %240 : vector<1x8x10xi32> to vector<1x8x10xf32>
    %242 = vector.extract_strided_slice %13 {offsets = [0, 0, 15], sizes = [1, 8, 1], strides = [1, 1, 1]} : vector<1x8x16xf32> to vector<1x8x1xf32>
    %243 = vector.shape_cast %242 : vector<1x8x1xf32> to vector<1x8xf32>
    %244 = vector.shape_cast %243 : vector<1x8xf32> to vector<1x8x1xf32>
    %245 = vector.broadcast %244 : vector<1x8x1xf32> to vector<1x8x10xf32>
    %246 = arith.mulf %245, %241 : vector<1x8x10xf32>
    %247 = arith.addf %233, %246 : vector<1x8x10xf32>
    %248 = vector.shape_cast %247 : vector<1x8x10xf32> to vector<8x10xf32>
    %cst_19 = arith.constant dense<0.000000e+00> : vector<8x32xf32>
    %249 = tpu.matmul %248, %4, %cst_19 {dimension_numbers = #tpu.dot_dimension_numbers<[1], [0], [0], [1], [0, 0, 1, 1], [], []>} : vector<8x10xf32>, vector<10x32xf32>, vector<8x32xf32> -> vector<8x32xf32>
    %250 = tpu.reciprocal %17 {approx = true} : vector<1x8x1xf32> -> vector<1x8x1xf32>
    %251 = arith.mulf %17, %250 : vector<1x8x1xf32>
    %cst_20 = arith.constant 2.000000e+00 : f32
    %252 = vector.broadcast %cst_20 : f32 to vector<1x8x1xf32>
    %253 = arith.subf %252, %251 : vector<1x8x1xf32>
    %254 = arith.mulf %250, %253 : vector<1x8x1xf32>
    %255 = vector.shape_cast %249 : vector<8x32xf32> to vector<1x8x32xf32>
    %256 = vector.broadcast %254 : vector<1x8x1xf32> to vector<1x8x32xf32>
    %257 = arith.mulf %255, %256 : vector<1x8x32xf32>
    %c0_21 = arith.constant 0 : index
    %c0_22 = arith.constant 0 : index
    %c0_23 = arith.constant 0 : index
    %258 = vector.load %arg6[%c0_21, %c0_22, %c0_23] : memref<1x8x32xf32, #tpu.memory_space<vmem>>, vector<1x8x32xf32>
    tpu.vector_store %arg6[%c0_21, %c0_22, %c0_23], %257 {strides = array<i32>} : memref<1x8x32xf32, #tpu.memory_space<vmem>>, vector<1x8x32xf32>,
    return
  }
  func.func @transform_0(%arg0: i32) -> (i32, i32, i32) {
    %c0_i32 = arith.constant 0 : i32
    %c0_i32_0 = arith.constant 0 : i32
    %c0_i32_1 = arith.constant 0 : i32
    return %arg0, %c0_i32, %c0_i32_0 : i32, i32, i32
  }
  func.func @transform_1(%arg0: i32) -> (i32, i32, i32) {
    %c0_i32 = arith.constant 0 : i32
    %c0_i32_0 = arith.constant 0 : i32
    %c0_i32_1 = arith.constant 0 : i32
    return %arg0, %c0_i32, %c0_i32_0 : i32, i32, i32
  }
  func.func @transform_2(%arg0: i32) -> (i32, i32, i32) {
    %c0_i32 = arith.constant 0 : i32
    %c0_i32_0 = arith.constant 0 : i32
    %c0_i32_1 = arith.constant 0 : i32
    return %arg0, %c0_i32, %c0_i32_0 : i32, i32, i32
  }
  func.func @transform_3(%arg0: i32) -> (i32, i32, i32) {
    %c0_i32 = arith.constant 0 : i32
    %c0_i32_0 = arith.constant 0 : i32
    %c0_i32_1 = arith.constant 0 : i32
    return %arg0, %c0_i32, %c0_i32_0 : i32, i32, i32
  }
  func.func @transform_4(%arg0: i32) -> (i32, i32) {
    %c0_i32 = arith.constant 0 : i32
    %c0_i32_0 = arith.constant 0 : i32
    %c0_i32_1 = arith.constant 0 : i32
    return %c0_i32, %c0_i32_0 : i32, i32
  }
  func.func @transform_5(%arg0: i32) -> (i32, i32, i32) {
    %c0_i32 = arith.constant 0 : i32
    %c0_i32_0 = arith.constant 0 : i32
    %c0_i32_1 = arith.constant 0 : i32
    return %arg0, %c0_i32, %c0_i32_0 : i32, i32, i32
  }
}

</mosaic_0001>

<bundles_post_ra>
// kernel: tpu_custom_call.1
= control target key start
LH: loop header
LB: loop body
LE: loop exit
PB: predicated region body
PF: predicated region fallthrough
CT: control target
= control target key end

     0   :  { %s1572_s0 = inlined_call_operand.hbm [shape: bf16[2,8,32], index: 0, kind: input, shape index: {}]   ;;  %s1573_s1 = inlined_call_operand.hbm [shape: bf16[2,16,32], index: 1, kind: input, shape index: {}]   ;;  %s1574_s2 = inlined_call_operand.hbm [shape: s32[2,8,16], index: 2, kind: input, shape index: {}]   ;;  %s1575_s3 = inlined_call_operand.hbm [shape: f32[2,8,16], index: 3, kind: input, shape index: {}]   ;;  %s1576_s4 = inlined_call_operand.hbm [shape: f32[10,32], index: 4, kind: input, shape index: {}]   ;;  %s1577_s5 = inlined_call_operand.hbm [shape: f32[2,8,32], index: 5, kind: output, shape index: {}]  }
   0x1   :  { %1583 = sst [smem:[#allocation21_spill]] %s1573_s1 }
   0x2   :  { %1584 = sst [smem:[#allocation22_spill]] %s1576_s4 }
   0x3   :  { %10 = vsyncpa [#allocation3], 0 }
   0x4   :  { %12 = vsyncpa [#allocation3 + $0x1], 0 }
   0x5   :  { %13 = vsyncpa [#allocation6], 0 }
   0x6   :  { %15 = vsyncpa [#allocation6 + $0x1], 0 }
   0x7   :  { %16 = vsyncpa [#allocation9], 0 }
   0x8   :  { %18 = vsyncpa [#allocation9 + $0x1], 0 }
   0x9   :  { %19 = vsyncpa [#allocation4], 0 }
   0xa   :  { %21 = vsyncpa [#allocation4 + $0x1], 0  ;;  %s1274_s18 = smov 0   ;;  %s1276_s19 = smov 0  }
   0xb   :  { %s1278_s20 = smov 0   ;;  %s1280_s21 = smov 0  }
   0xc LB: > { %1585 = sst [smem:[#allocation17_spill]] %s1216_s20  ;;  %s1295_s22 = sadd.s32 4294967295, %s1220_s21   ;;  %s1220_s21 = sphi %s1280_s21, %s1599_s21   ;;  %s1216_s20 = sphi %s1278_s20, %s1601_s20   ;;  %s1212_s19 = sphi %s1276_s19, %s1603_s19   ;;  %s1208_s18 = sphi %s1274_s18, %s1602_s18  }
   0xd   : > { %s813_s23 = sadd.s32 4294967294, %s1220_s21   ;;  %p47_p0 = scmp.ne.s32.totalorder %s1212_s19, %s1208_s18 }
   0xe   : > { %p48_p1 = scmp.eq.s32.totalorder %s1295_s22, 0  ;;  %p170_p2 = scmp.eq.s32.totalorder %s1295_s22, 1 }
   0xf   : > { %p176_p3 = scmp.eq.s32.totalorder %s813_s23, 1  ;;  %p814_p5 = scmp.ge.s32.totalorder %s1220_s21, 1 }
  0x10   : > { %p1304_p4 = por %p48_p1, %p47_p0  ;;  %p183_p7 = scmp.lt.s32.totalorder %s1220_s21, 3 }
  0x11   : > { %p1309_p6 = por %p176_p3, %p47_p0  ;;  %s1589_s4 = sld [smem:[#allocation22_spill]] }
  0x12   : > { %p1317_p8 = pnand %p814_p5, %p183_p7  ;;  %s1222_s30 = smov [#allocation10]  }
  0x13   : > { %s1587_s25 = scalar_select %p1309_p6, 1, 0 }
  0x14   : > { %p876_p9 = pneg %p1317_p8  ;;  %s196_s6 = sshll.u32 %s1222_s30, 4  ;;  %s197_s6 = int_to_ptr.vmem [resolvable:$true] %s196_s6 }
  0x15   : > { %1588 = sst [smem:[#allocation18_spill]] %s1587_s25  ;;  %s1327_s7 = sadd.s32 1, %s1220_s21  }
  0x16   : > { %p877_p10 = pnand %p876_p9, %p48_p1  ;;  %1591 = sst [smem:[#allocation19_spill]] %s1327_s7 }
  0x17   : > { %s194_s28 = sshll.u32 %s1589_s4, 4  ;;  %s1223_s8 = smov 128   ;;  %s195_s28 = int_to_ptr.hbm [resolvable:$true] %s194_s28 }
  0x18   : > { %s1224_s9 = smov 8   ;;  %s31_s10 = ssub.s32 %s1220_s21, %s1327_s7 }
  0x19   : > { %879 = dma.hbm_to_vmem [thread:$0]  (!%p877_p10), %s195_s28, 256, %s197_s6, [#allocation9], %s1223_s8, %s1223_s8, %s1224_s9  }
  0x1a   : > { %s34_s11 = sadd.s32 1, %s1216_s20  ;;  %p32_p12 = scmp.eq.s32.totalorder %s31_s10, 0 }
  0x1b   : > { %p41_p13 = scmp.ne.s32.totalorder %s1216_s20, %s1212_s19  ;;  %p42_p0 = scmp.eq.s32.totalorder %s1220_s21, 0 }
  0x1c   : > { %p898_p3 = scmp.lt.s32.totalorder %s1220_s21, 2  ;;  %s1346_s14 = sand.u32 1, %s1216_s20  }
  0x1d   : > { %s1337_s12 = scalar_select %p32_p12, %s1216_s20, %s34_s11  }
  0x1e   : > { %p43_p5 = por %p42_p0, %p41_p13  ;;  %p1341_p7 = por %p170_p2, %p41_p13 }
  0x1f   : > { %1592 = sst [smem:[#allocation20_spill]] %s1337_s12  ;;  %s1578_s15 = sand.u32 1, %s1220_s21  }
  0x20   : > { %p1349_p9 = pnand %p898_p3, %p43_p5  ;;  %s1354_s17 = sshll.u32 %s1346_s14, 3 }
  0x21   : > { %s1357_s23 = sshll.u32 %s1220_s21, 3  ;;  %s1595_s1 = sld [smem:[#allocation21_spill]] }
  0x22   : > { %s233_s30 = scalar_lea.vmem [#allocation5], %s1354_s17  ;;  %s1366_s9 = scalar_lea.sflag [#allocation6], %s1578_s15 }
  0x23   : > { %s241_s6 = sshll.u32 %s233_s30, 4  ;;  %p1026_p10 = pneg %p1349_p9  ;;  %s242_s6 = int_to_ptr.vmem [resolvable:$true] %s241_s6 }
  0x27   : > { %s238_s28 = scalar_lea.hbm %s1595_s1, %s1357_s23  ;;  %s1029_s30 = scalar_lea.hbm %s1595_s1, 16 }
  0x28   : > { %s239_s8 = sshll.u32 %s238_s28, 4  ;;  %s240_s8 = int_to_ptr.hbm [resolvable:$true] %s239_s8 }
  0x29   : > { %s1022_s10 = sshra.s32 %s240_s8, 4  ;;  %s1023_s10 = int_to_ptr.hbm [resolvable:$true] %s1022_s10 }
  0x2a   : > { %s1024_s11 = scalar_lea.hbm %s1023_s10, 8  ;;  %p1030_p0 = scmp.lt.s32.totalorder %s1023_s10, %s1595_s1 }
  0x2b   : > { %p1025_p2 = scmp.ne.s32.totalorder %s1023_s10, %s1024_s11  ;;  %p1031_p3 = scmp.lt.s32.totalorder %s1029_s30, %s1024_s11 }
  0x2d   : > { %p1027_p12 = pnand %p1026_p10, %p1025_p2  ;;  %p1032_p5 = por %p1031_p3, %p1030_p0 }
  0x2f   : > { %p1028_p13 = pneg %p1027_p12 }
  0x31   : > { %p1033_p11 = pnand %p1032_p5, %p1028_p13 }
  0x33   : > { %1036 = shalt.err (!%p1033_p11)
}
  0x34   : > { %s1225_s15 = smov 64   ;;  %s1226_s12 = smov 4  }
  0x35   : > { %886 = dma.hbm_to_vmem [thread:$0]  (!%p1349_p9), %s240_s8, 128, %s242_s6, %s1366_s9, %s1225_s15, %s1225_s15, %s1226_s12  }
  0x36   : > { %s817_s26 = sshll.u32 %s1346_s14, 2  ;;  %s818_s27 = sshll.u32 %s1220_s21, 2 }
  0x37   : > { %s218_s4 = scalar_lea.hbm %s1572_s0, %s818_s27  ;;  %s214_s11 = scalar_lea.vmem [#allocation2], %s817_s26 }
  0x38   : > { %s220_s10 = sshll.u32 %s218_s4, 4  ;;  %s222_s30 = sshll.u32 %s214_s11, 4  ;;  %s221_s10 = int_to_ptr.hbm [resolvable:$true] %s220_s10  ;;  %s223_s30 = int_to_ptr.vmem [resolvable:$true] %s222_s30 }
  0x39   : > { %s211_s28 = scalar_lea.sflag [#allocation3], %s1346_s14  ;;  %s1052_s1 = sshra.s32 %s221_s10, 4  ;;  %s1053_s1 = int_to_ptr.hbm [resolvable:$true] %s1052_s1 }
  0x3a   : > { %s1054_s25 = scalar_lea.hbm %s1053_s1, 4  ;;  %s1059_s6 = scalar_lea.hbm %s1572_s0, 8 }
  0x3b   : > { %p1055_p11 = scmp.ne.s32.totalorder %s1053_s1, %s1054_s25  ;;  %p1060_p13 = scmp.lt.s32.totalorder %s1053_s1, %s1572_s0 }
  0x3c   : > { %p1061_p0 = scmp.lt.s32.totalorder %s1059_s6, %s1054_s25 }
  0x3d   : > { %p1057_p2 = pnand %p1055_p11, %p1026_p10 }
  0x3e   : > { %p1062_p3 = por %p1061_p0, %p1060_p13 }
  0x3f   : > { %p1058_p12 = pneg %p1057_p2 }
  0x41   : > { %p1063_p5 = pnand %p1062_p3, %p1058_p12 }
  0x43   : > { %1066 = shalt.err (!%p1063_p5)
}
  0x44   : > { %883 = dma.hbm_to_vmem [thread:$0]  (!%p1349_p9), %s221_s10, 64, %s223_s30, %s211_s28  }
  0x45   : > { %s259_s26 = scalar_lea.hbm %s1574_s2, %s1357_s23  ;;  %s255_s4 = scalar_lea.vmem [#allocation7], %s1354_s17 }
  0x46   : > { %s261_s27 = sshll.u32 %s259_s26, 4  ;;  %s263_s11 = sshll.u32 %s255_s4, 4  ;;  %s262_s27 = int_to_ptr.hbm [resolvable:$true] %s261_s27  ;;  %s264_s11 = int_to_ptr.vmem [resolvable:$true] %s263_s11 }
  0x47   : > { %s1082_s1 = sshra.s32 %s262_s27, 4  ;;  %s1089_s10 = scalar_lea.hbm %s1574_s2, 16  ;;  %s1083_s1 = int_to_ptr.hbm [resolvable:$true] %s1082_s1 }
  0x48   : > { %s1084_s25 = scalar_lea.hbm %s1083_s1, 8  ;;  %p1090_p13 = scmp.lt.s32.totalorder %s1083_s1, %s1574_s2 }
  0x49   : > { %p1085_p11 = scmp.ne.s32.totalorder %s1083_s1, %s1084_s25  ;;  %p1091_p0 = scmp.lt.s32.totalorder %s1089_s10, %s1084_s25 }
  0x4b   : > { %p1087_p2 = pnand %p1085_p11, %p1026_p10  ;;  %p1092_p3 = por %p1091_p0, %p1090_p13 }
  0x4d   : > { %p1088_p12 = pneg %p1087_p2 }
  0x4f   : > { %p1093_p5 = pnand %p1092_p3, %p1088_p12 }
  0x51   : > { %1096 = shalt.err (!%p1093_p5)
}
  0x52   : > { %889 = dma.hbm_to_vmem [thread:$0]  (!%p1349_p9), %s262_s27, 128, %s264_s11, %s1366_s9  }
  0x53   : > { %s278_s7 = scalar_lea.hbm %s1575_s3, %s1357_s23  ;;  %s274_s14 = scalar_lea.vmem [#allocation8], %s1354_s17 }
  0x54   : > { %s282_s8 = sshll.u32 %s274_s14, 4  ;;  %s280_s26 = sshll.u32 %s278_s7, 4  ;;  %s283_s8 = int_to_ptr.vmem [resolvable:$true] %s282_s8  ;;  %s281_s26 = int_to_ptr.hbm [resolvable:$true] %s280_s26 }
  0x55   : > { %s1596_s4 = sand.u32 1, %s1220_s21   ;;  %s1112_s25 = sshra.s32 %s281_s26, 4  ;;  %s1113_s25 = int_to_ptr.hbm [resolvable:$true] %s1112_s25 }
  0x56   : > { %s271_s1 = scalar_lea.sflag [#allocation9], %s1596_s4  ;;  %s1114_s12 = scalar_lea.hbm %s1113_s25, 8 }
  0x57   : > { %p1115_p11 = scmp.ne.s32.totalorder %s1113_s25, %s1114_s12  ;;  %s1119_s11 = scalar_lea.hbm %s1575_s3, 16 }
  0x58   : > { %p1120_p13 = scmp.lt.s32.totalorder %s1113_s25, %s1575_s3  ;;  %p1121_p0 = scmp.lt.s32.totalorder %s1119_s11, %s1114_s12 }
  0x59   : > { %p1117_p2 = pnand %p1115_p11, %p1026_p10 }
  0x5a   : > { %p1122_p3 = por %p1121_p0, %p1120_p13 }
  0x5b   : > { %p1118_p12 = pneg %p1117_p2 }
  0x5d   : > { %p1123_p5 = pnand %p1122_p3, %p1118_p12 }
  0x5f   : > { %1126 = shalt.err (!%p1123_p5)
}
  0x60   : > { %892 = dma.hbm_to_vmem [thread:$0]  (!%p1349_p9), %s281_s26, 128, %s283_s8, %s271_s1  }
  0x61   : > { %291 = sbr.rel (%p1317_p8) target bundleno = 574 (0x23e), region = 40  ;;  %s1437_s15 = sand.u32 (!%p1317_p8), 1, %s1212_s19  }
  0x62   : > { %s827_s10 = sshll.u32 (!%p1317_p8), %s1437_s15, 2  ;;  %s294_s30 = scalar_lea.sflag (!%p1317_p8), [#allocation3], %s1437_s15 }
  0x63   : > { %s1441_s28 = scalar_lea.vmem (!%p1317_p8), [#allocation2], %s827_s10 }
  0x66   : > { %1187 = dma.done.wait (%p1304_p4), %s294_s30, 64  }
  0x67   : > { %1189 = vsyncadd (%p1304_p4), %s294_s30, 4294967232  ;;  %s303_s29 = sand.u32 1, %s1295_s22   ;;  %s1449_s16 = sshll.u32 %s1437_s15, 3 }
  0x68   : > { %s304_s6 = scalar_lea.sflag [#allocation6], %s303_s29  ;;  %s307_s20 = scalar_lea.vmem [#allocation5], %s1449_s16 }
  0x69   : > { %1191 = dma.done.wait (%p1304_p4), %s304_s6, 256  }
  0x6a   : > { %1193 = vsyncadd (%p1304_p4), %s304_s6, 4294967040  ;;  %s317_s7 = scalar_lea.vmem [#allocation7], %s1449_s16  ;;  %s324_s14 = scalar_lea.sflag [#allocation9], %s303_s29 }
  0x6b   : > { %s327_s8 = scalar_lea.vmem [#allocation8], %s1449_s16 }
  0x6c   : > { %1195 = dma.done.wait (%p1304_p4), %s324_s14, 128  }
  0x6d   : > { %1197 = vsyncadd (%p1304_p4), %s324_s14, 4294967168 }
  0x6e   : > { %1199 = dma.done.wait (%p48_p1), [#allocation9], 256  }
  0x6f   : > { %1201 = vsyncadd (%p48_p1), [#allocation9], 4294967040  ;;  %v1227_v0 = vmov 3   ;;  %v1228_v1 = vmov 2   ;;  %v1229_v2 = vmov 0   ;;  %vm388_vm0 = vcmask 261120  }
  0x70   : > { %958 = vset.pattern.permute.xlu1 %v1227_v0  ;;  %957 = vset.pattern.permute.xlu2 %v1228_v1  ;;  %v861_v3 = vld [vmem:[%s307_s20] sm:$0xff]  ;;  %v379_v4 = vld [vmem:[%s317_s7] sm:$0xff]  ;;  %v1230_v9 = vmov 7   ;;  %v1231_v10 = vmov 5   ;;  %v1232_v11 = vmov 1   ;;  %v1233_v12 = vmov 8  }
  0x71   : > { %955 = vset.pattern.permute.xlu0 %v1229_v2  ;;  %vm419_vm1 = vcmp.gt.s32.totalorder %v379_v4, 0  ;;  %v393_v5 = vsel %vm388_vm0, %v861_v3, 0  ;;  %v376_v8 = vld [vmem:[%s1441_s28] sm:$0xf]  ;;  %v1234_v13 = vmov 6   ;;  %v1235_v14 = vmov 4  }
  0x72   : > { %v420_v6 = vsel %vm419_vm1, %v379_v4, 0  ;;  %402 = vmatpush.bf16.xpose.msra.mxu0 %v393_v5  ;;  %v1236_v15 = vmov 12   ;;  %v1237_v16 = vmov 10   ;;  %v1238_v17 = vmov 13   ;;  %v380_v21 = vld [vmem:[%s327_s8] sm:$0xff]  ;;  %s857_s24 = sshll.u32 %s1295_s22, 3 }
  0x73   : > { %vm421_vm2 = vcmp.lt.s32.totalorder %v420_v6, 9  ;;  %v1239_v18 = vmov 11   ;;  %v1240_v19 = vmov 9   ;;  %v409_v24 = vmax.f32 %v380_v21, 0.0  ;;  %s663_s1 = scalar_lea.hbm %s1577_s5, %s857_s24  ;;  %s374_s25 = scalar_lea.vmem [#allocation11], %s1449_s16 }
  0x74   : > { %v1468_v7 = vsel %vm421_vm2, %v420_v6, 9  ;;  %v1241_v29 = vmov 14   ;;  %v1242_v30 = vmov 15   ;;  %vm414_vm3 = vcmask 130048   ;;  %s665_s12 = sshll.u32 %s374_s25, 4  ;;  %s667_s9 = sshll.u32 %s663_s1, 4  ;;  %s666_s12 = int_to_ptr.vmem [resolvable:$true] %s665_s12  ;;  %s668_s9 = int_to_ptr.hbm [resolvable:$true] %s667_s9 }
  0x75   : > { %463 = vperm.xlu1 %958, %v1468_v7   ;;  %451 = vperm.xlu2 %957, %v1468_v7   ;;  %v410_v25 = vmin.f32 %v409_v24, 1.0  ;;  %v423_v46 = vlaneseq  ;;  %v1243_v51 = vmov 0.0   ;;  %vm622_vm13 = vcmask 1041408   ;;  %s653_s27 = scalar_lea.sflag [#allocation4], %s1437_s15  ;;  %s1156_s11 = sshra.s32 %s668_s9, 4  ;;  %s1157_s11 = int_to_ptr.hbm [resolvable:$true] %s1156_s11 }
  0x76   : > { %426 = vperm.xlu0 %955, %v1468_v7   ;;  %s1158_s22 = scalar_lea.hbm %s1157_s11, 8  ;;  %s1162_s10 = scalar_lea.hbm %s1577_s5, 16 }
  0x77   : > { %v1499_v47 = vand.u32 127, %v423_v46  ;;  %p1159_p1 = scmp.ne.s32.totalorder %s1157_s11, %s1158_s22  ;;  %p1163_p9 = scmp.lt.s32.totalorder %s1157_s11, %s1577_s5 }
  0x78   : > { %p1164_p10 = scmp.lt.s32.totalorder %s1162_s10, %s1158_s22 }
  0x79   : > { %837 = vmatmul.msk.bf16.vlgmr.msra.gmra.mxu0 %vm388_vm0, %v376_v8  ;;  %p1160_p4 = pnand %p1159_p1, %p1341_p7 }
  0x7a   : > { %p1165_p11 = por %p1164_p10, %p1163_p9 }
  0x7b   : > { %p1161_p8 = pneg %p1160_p4 }
  0x7d   : > { %962 = vset.pattern.permute.xlu1 %v1230_v9  ;;  %960 = vset.pattern.permute.xlu2 %v1231_v10  ;;  %p1166_p2 = pnand %p1165_p11, %p1161_p8 }
  0x7e   : > { %511 = vperm.xlu1 %962, %v1468_v7   ;;  %487 = vperm.xlu2 %960, %v1468_v7  }
  0x7f   : > { %956 = vset.pattern.permute.xlu0 %v1232_v11 }
  0x80   : > { %439 = vperm.xlu0 %956, %v1468_v7  }
  0x86   : > { %963 = vset.pattern.permute.xlu1 %v1233_v12  ;;  %961 = vset.pattern.permute.xlu2 %v1234_v13 }
  0x87   : > { %523 = vperm.xlu1 %963, %v1468_v7   ;;  %499 = vperm.xlu2 %961, %v1468_v7  }
  0x88   : > { %959 = vset.pattern.permute.xlu0 %v1235_v14 }
  0x89   : > { %475 = vperm.xlu0 %959, %v1468_v7  }
  0x8f   : > { %967 = vset.pattern.permute.xlu1 %v1236_v15  ;;  %965 = vset.pattern.permute.xlu2 %v1237_v16 }
  0x90   : > { %571 = vperm.xlu1 %967, %v1468_v7   ;;  %547 = vperm.xlu2 %965, %v1468_v7  }
  0x91   : > { %964 = vset.pattern.permute.xlu0 %v1240_v19 }
  0x92   : > { %535 = vperm.xlu0 %964, %v1468_v7  }
  0x98   : > { %968 = vset.pattern.permute.xlu1 %v1238_v17  ;;  %966 = vset.pattern.permute.xlu2 %v1239_v18 }
  0x99   : > { %583 = vperm.xlu1 %968, %v1468_v7   ;;  %559 = vperm.xlu2 %966, %v1468_v7  }
  0x9a   : > { %975 = vset.pattern.permute.xlu0 %v1234_v13 }
  0xa1   : > { %969 = vset.pattern.permute.xlu1 %v1229_v2  ;;  %971 = vset.pattern.permute.xlu2 %v1228_v1 }
  0xcf   : > { %v452_v31 = vpop.permute.xlu2 %451 }
  0xd0   : > { %vm453_vm6 = vcmp.eq.s32.totalorder %v452_v31, %v1499_v47 }
  0xd1   : > { %v840_v60 = vsel %vm453_vm6, 1.0, %v1243_v51  ;;  %vm618_vm6 = vcmask 80896  }
  0xd8   : > { %v488_v33 = vpop.permute.xlu2 %487 }
  0xd9   : > { %vm489_vm9 = vcmp.eq.s32.totalorder %v488_v33, %v1499_v47 }
  0xda   : > { %v843_v6 = vsel %vm489_vm9, 1.0, %v1243_v51 }
  0xe1   : > { %v500_v35 = vpop.permute.xlu2 %499 }
  0xe2   : > { %vm501_vm10 = vcmp.eq.s32.totalorder %v500_v35, %v1499_v47 }
  0xe7   : > { %v464_v32 = vpop.permute.xlu1 %463 }
  0xe8   : > { %v427_v40 = vpop.permute.xlu0 %426  ;;  %vm465_vm8 = vcmp.eq.s32.totalorder %v464_v32, %v1499_v47 }
  0xe9   : > { %vm428_vm5 = vcmp.eq.s32.totalorder %v427_v40, %v1499_v47 }
  0xea   : > { %v1491_v37 = vpop.permute.xlu2 %547  ;;  %v838_v53 = vsel %vm428_vm5, 1.0, %v1243_v51 }
  0xeb   : > { %vm549_vm15 = vcmp.eq.s32.totalorder %v1491_v37, %v1499_v47 }
  0xf0   : > { %v512_v34 = vpop.permute.xlu1 %511 }
  0xf1   : > { %vm513_vm11 = vcmp.eq.s32.totalorder %v512_v34, %v1499_v47 }
  0xf2   : > { %v440_v43 = vpop.permute.xlu0 %439  ;;  %v845_v13 = vsel %vm513_vm11, 1.0, %v1243_v51 }
  0xf3   : > { %v1495_v41 = vpop.permute.xlu2 %559  ;;  %vm441_vm4 = vcmp.eq.s32.totalorder %v440_v43, %v1499_v47 }
  0xf4   : > { %v839_v52 = vsel %vm441_vm4, 1.0, %v1243_v51  ;;  %vm561_vm1 = vcmp.eq.s32.totalorder %v1495_v41, %v1499_v47 }
  0xf5   : > { %v849_v31 = vsel %vm561_vm1, 1.0, %v1243_v51 }
  0xf6   : > { %v404_v20 = vpop.f32.mrf.mxu0 }
  0xf7   : > { %v408_v22 = vmul.f32 0.17677669, %v404_v20  ;;  %v381_v20 = vld [vmem:[#allocation10] sm:$0xff] }
  0xf9   : > { %v411_v23 = vmul.f32 1.442695, %v408_v22  ;;  %v524_v36 = vpop.permute.xlu1 %523 }
  0xfa   : > { %vm525_vm12 = vcmp.eq.s32.totalorder %v524_v36, %v1499_v47 }
  0xfb   : > { %988 = vpow2.f32 %v411_v23  ;;  %v476_v48 = vpop.permute.xlu0 %475 }
  0xfc   : > { %vm477_vm7 = vcmp.eq.s32.totalorder %v476_v48, %v1499_v47 }
  0xfd   : > { %v842_v62 = vsel %vm477_vm7, 1.0, %v1243_v51 }
  0xfe   : > { %v406_v26 = vpop.f32.mrf.mxu0 }
 0x101   : > { %v989_v27 = vpop.eup %988 }
 0x102   : > { %v413_v28 = vmul.f32 %v989_v27, %v410_v25  ;;  %v1493_v39 = vpop.permute.xlu1 %571  ;;  %v848_v27 = vsel %vm549_vm15, 1.0, %v1243_v51 }
 0x103   : > { %vm573_vm2 = vcmp.eq.s32.totalorder %v1493_v39, %v1499_v47 }
 0x104   : > { %505 = vperm.xlu0 %975, %v413_v28   ;;  %457 = vperm.xlu2 %971, %v413_v28   ;;  %v415_v38 = vsel %vm414_vm3, %v413_v28, 0.0  ;;  %v536_v55 = vpop.permute.xlu0 %535  ;;  %v850_v35 = vsel %vm573_vm2, 1.0, %v1243_v51 }
 0x105   : > { %433 = vperm.xlu1 %969, %v413_v28   ;;  %vm537_vm14 = vcmp.eq.s32.totalorder %v536_v55, %v1499_v47 }
 0x106   : > { %v847_v24 = vsel %vm537_vm14, 1.0, %v1243_v51 }
 0x10b   : > { %v1497_v42 = vpop.permute.xlu1 %583 }
 0x10c   : > { %980 = vset.pattern.permute.xlu0 %v1239_v18  ;;  %972 = vset.pattern.permute.xlu2 %v1227_v0  ;;  %v841_v0 = vsel %vm465_vm8, 1.0, %v1243_v51  ;;  %vm585_vm3 = vcmp.eq.s32.totalorder %v1497_v42, %v1499_v47 }
 0x10d   : > { %970 = vset.pattern.permute.xlu1 %v1232_v11  ;;  %565 = vperm.xlu0 %980, %v413_v28   ;;  %v851_v43 = vsel %vm585_vm3, 1.0, %v1243_v51 }
 0x10e   : > { %469 = vperm.xlu2 %972, %v413_v28   ;;  %445 = vperm.xlu1 %970, %v413_v28  }
 0x115   : > { %983 = vset.pattern.permute.xlu0 %v1241_v29 }
 0x116   : > { %976 = vset.pattern.permute.xlu2 %v1230_v9  ;;  %973 = vset.pattern.permute.xlu1 %v1235_v14 }
 0x117   : > { %517 = vperm.xlu2 %976, %v413_v28   ;;  %481 = vperm.xlu1 %973, %v413_v28  }
 0x118   : > { %595 = vperm.xlu0 %983, %v1468_v7  }
 0x11f   : > { %977 = vset.pattern.permute.xlu2 %v1233_v12  ;;  %974 = vset.pattern.permute.xlu1 %v1231_v10  ;;  %v844_v10 = vsel %vm501_vm10, 1.0, %v1243_v51 }
 0x120   : > { %529 = vperm.xlu2 %977, %v413_v28   ;;  %493 = vperm.xlu1 %974, %v413_v28  }
 0x121   : > { %987 = vset.pattern.permute.xlu0 %v1242_v30 }
 0x128   : > { %981 = vset.pattern.permute.xlu2 %v1236_v15  ;;  %978 = vset.pattern.permute.xlu1 %v1240_v19 }
 0x129   : > { %577 = vperm.xlu2 %981, %v413_v28   ;;  %541 = vperm.xlu1 %978, %v413_v28  }
 0x131   : > { %982 = vset.pattern.permute.xlu2 %v1238_v17  ;;  %979 = vset.pattern.permute.xlu1 %v1237_v16  ;;  %v382_v16 = vld [vmem:[#allocation10 + $0x8] sm:$0x3]  ;;  %v846_v17 = vsel %vm525_vm12, 1.0, %v1243_v51 }
 0x132   : > { %589 = vperm.xlu2 %982, %v413_v28   ;;  %553 = vperm.xlu1 %979, %v413_v28  }
 0x133   : > { %854 = vmatpush.msk.msra.mxu1 %vm622_vm13, %v382_v16 }
 0x135   : > { %641 = vmatpush.msra.mxu1 %v381_v20 }
 0x13a   : > { %984 = vset.pattern.permute.xlu2 %v1242_v30  ;;  %985 = vset.pattern.permute.xlu1 %v1241_v29 }
 0x13b   : > { %607 = vperm.xlu2 %984, %v1468_v7   ;;  %601 = vperm.xlu1 %985, %v413_v28  }
 0x143   : > { %986 = vset.pattern.permute.xlu1 %v1242_v30 }
 0x144   : > { %613 = vperm.xlu1 %986, %v413_v28  }
 0x15e   : > { %v458_v44 = vpop.permute.xlu2 %457 }
 0x15f   : > { %v460_v61 = vmul.f32 %v840_v60, %v458_v44 }
 0x164   : > { %416 = vadd.xlane.f32.xlu2 %v415_v38 }
 0x168   : > { %v470_v49 = vpop.permute.xlu2 %469 }
 0x169   : > { %v472_v1 = vmul.f32 %v841_v0, %v470_v49 }
 0x171   : > { %v518_v57 = vpop.permute.xlu2 %517 }
 0x172   : > { %v520_v14 = vmul.f32 %v845_v13, %v518_v57 }
 0x176   : > { %v506_v3 = vpop.permute.xlu0 %505 }
 0x177   : > { %v434_v45 = vpop.permute.xlu1 %433  ;;  %v508_v11 = vmul.f32 %v844_v10, %v506_v3 }
 0x178   : > { %v436_v56 = vmul.f32 %v838_v53, %v434_v45 }
 0x17a   : > { %v530_v5 = vpop.permute.xlu2 %529 }
 0x17b   : > { %v532_v18 = vmul.f32 %v846_v17, %v530_v5 }
 0x17f   : > { %v566_v26 = vpop.permute.xlu0 %565 }
 0x180   : > { %v446_v50 = vpop.permute.xlu1 %445  ;;  %v568_v33 = vmul.f32 %v849_v31, %v566_v26 }
 0x181   : > { %v448_v54 = vmul.f32 %v839_v52, %v446_v50 }
 0x183   : > { %v449_v58 = vadd.f32 %v448_v54, %v436_v56  ;;  %v578_v23 = vpop.permute.xlu2 %577 }
 0x184   : > { %v580_v36 = vmul.f32 %v850_v35, %v578_v23 }
 0x185   : > { %v461_v63 = vadd.f32 %v460_v61, %v449_v58 }
 0x187   : > { %v473_v4 = vadd.f32 %v472_v1, %v461_v63 }
 0x189   : > { %v482_v59 = vpop.permute.xlu1 %481 }
 0x18a   : > { %v484_v2 = vmul.f32 %v842_v62, %v482_v59  ;;  %v596_v38 = vpop.permute.xlu0 %595 }
 0x18b   : > { %vm597_vm4 = vcmp.eq.s32.totalorder %v596_v38, %v1499_v47 }
 0x18c   : > { %v485_v8 = vadd.f32 %v484_v2, %v473_v4  ;;  %v590_v32 = vpop.permute.xlu2 %589  ;;  %v852_v44 = vsel %vm597_vm4, 1.0, %v1243_v51 }
 0x18d   : > { %v592_v45 = vmul.f32 %v851_v43, %v590_v32 }
 0x192   : > { %v494_v7 = vpop.permute.xlu1 %493 }
 0x193   : > { %v496_v9 = vmul.f32 %v843_v6, %v494_v7 }
 0x195   : > { %v497_v12 = vadd.f32 %v496_v9, %v485_v8  ;;  %v608_v39 = vpop.permute.xlu2 %607 }
 0x196   : > { %vm609_vm5 = vcmp.eq.s32.totalorder %v608_v39, %v1499_v47 }
 0x197   : > { %v509_v15 = vadd.f32 %v508_v11, %v497_v12  ;;  %v853_v49 = vsel %vm609_vm5, 1.0, %v1243_v51 }
 0x199   : > { %v521_v19 = vadd.f32 %v520_v14, %v509_v15 }
 0x19b   : > { %v533_v21 = vadd.f32 %v532_v18, %v521_v19  ;;  %v542_v22 = vpop.permute.xlu1 %541 }
 0x19c   : > { %v544_v25 = vmul.f32 %v847_v24, %v542_v22 }
 0x19e   : > { %v545_v29 = vadd.f32 %v544_v25, %v533_v21 }
 0x1a4   : > { %v554_v28 = vpop.permute.xlu1 %553 }
 0x1a5   : > { %v556_v30 = vmul.f32 %v848_v27, %v554_v28 }
 0x1a7   : > { %v557_v34 = vadd.f32 %v556_v30, %v545_v29 }
 0x1a9   : > { %v569_v37 = vadd.f32 %v568_v33, %v557_v34 }
 0x1ab   : > { %v581_v40 = vadd.f32 %v580_v36, %v569_v37 }
 0x1ad   : > { %v602_v41 = vpop.permute.xlu1 %601  ;;  %v593_v46 = vadd.f32 %v592_v45, %v581_v40 }
 0x1ae   : > { %v604_v48 = vmul.f32 %v852_v44, %v602_v41 }
 0x1b0   : > { %v605_v52 = vadd.f32 %v604_v48, %v593_v46 }
 0x1b6   : > { %v614_v50 = vpop.permute.xlu1 %613 }
 0x1b7   : > { %v616_v42 = vmul.f32 %v853_v49, %v614_v50 }
 0x1b9   : > { %v617_v53 = vadd.f32 %v616_v42, %v605_v52 }
 0x1bb   : > { %855 = vmatmul.msk.f32.vlgmr.msra.gmra.mxu1 %vm618_vm6, %v617_v53 }
 0x1d7   : > { %v417_v54 = vpop.xlane.xlu2 %416 }
 0x1d8   : > { %v418_v55 = vadd.f32 1e-10, %v417_v54 }
 0x1da   : > { %990 = vrcp.f32 %v418_v55 }
 0x1e0   : > { %v991_v56 = vpop.eup %990 }
 0x1e1   : > { %v647_v57 = vmul.f32 %v991_v56, %v418_v55 }
 0x1e3   : > { %v648_v58 = vsub.f32 2.0, %v647_v57 }
 0x1e5   : > { %v649_v47 = vmul.f32 %v991_v56, %v648_v58 }
 0x238   : > { %v643_v51 = vpop.f32.mrf.mxu1 }
 0x239   : > { %v650_v59 = vmul.f32 %v649_v47, %v643_v51 }
 0x23b   : > { %651 = vst.msk [vmem:[%s374_s25] sm:$0xff] %vm388_vm0, %v650_v59 }
 0x23c   : > { %1169 = shalt.err (!%p1166_p2)
}
 0x23d   : > { %874 = dma.vmem_to_hbm [thread:$0]  (%p1341_p7), %s666_s12, 128, %s668_s9, %s653_s27  }
 0x23e PF: > { %s679_s29 = sand.u32 1, %s1208_s18   ;;  %p1598_p12 = scmp.ge.s32.totalorder %s1220_s21, 2 }
 0x23f   : > { %s680_s16 = scalar_lea.sflag [#allocation4], %s679_s29 }
 0x240   : > { %p894_p13 = pnand %p1598_p12, %p1309_p6 }
 0x242   : > { %p895_p0 = pneg %p894_p13 }
 0x244   : > { %1203 = dma.done.wait (%p895_p0), %s680_s16, 128  }
 0x245   : > { %1205 = vsyncadd (%p895_p0), %s680_s16, 4294967168  ;;  %s1599_s21 = sld [smem:[#allocation19_spill]]  ;;  %s1602_s18 = smov %s1212_s19 }
 0x246   : > { %s1600_s6 = sld [smem:[#allocation17_spill]] }
 0x247   : > { %s1601_s20 = sld [smem:[#allocation20_spill]] }
 0x24b   : > { %p24_p3 = scmp.ge.s32.totalorder %s1599_s21, 4  }
 0x24c   : > { %s1603_s19 = smov %s1600_s6 }
 0x24d   :  { %26 = sbr.rel (!%p24_p3) target bundleno = 12 (0xc), region = 126 }
 0x252   :  { %686 = vsyncpa [#allocation3], 1 }
 0x253   :  { %688 = vsyncpa [#allocation3 + $0x1], 1 }
 0x254   :  { %689 = vsyncpa [#allocation6], 1 }
 0x255   :  { %691 = vsyncpa [#allocation6 + $0x1], 1 }
 0x256   :  { %692 = vsyncpa [#allocation9], 1 }
 0x257   :  { %694 = vsyncpa [#allocation9 + $0x1], 1 }
 0x258   :  { %695 = vsyncpa [#allocation4], 1 }
 0x259   :  { %697 = vsyncpa [#allocation4 + $0x1], 1 }

</bundles_post_ra>
